<compile_context>
chip_gen: v5e
topology: v5e:2x2
jax: 0.10.0
libtpu: 0.0.40
codegen_flags: <defaults>
</compile_context>

<pallas_src>
import functools

import jax
import jax.numpy as jnp
from jax.experimental import pallas as pl
from jax.experimental.pallas import tpu as pltpu

OUT_PAD = 128  # lane-dense padded output width (>= action_dim)


def _round_up(x, m):
    return (x + m - 1) // m * m


def actor_kernel(x_ref, w1_ref, b1_ref, w2_ref, b2_ref, w34_ref, b34_ref,
                 o_ref, *, max_action):
    # layer 1: (TB, S)bf16 @ (S, 256)bf16 -> f32 acc, + b1, relu
    h1 = jnp.dot(x_ref[...], w1_ref[...], preferred_element_type=jnp.float32)
    h1 = jnp.maximum(h1 + b1_ref[...], 0.0)
    # layer 2: (TB, 256) @ (256, 128)
    h2 = jnp.dot(h1.astype(jnp.bfloat16), w2_ref[...],
                 preferred_element_type=jnp.float32)
    h2 = jnp.maximum(h2 + b2_ref[...], 0.0)
    # fused layers 3 + 4: (TB, 128) @ (128, OUT_PAD); cols 0..1 -> tanh head,
    # cols 2..action_dim-1 -> sigmoid head, rest is zero padding (sliced off
    # in the wrapper).
    z = jnp.dot(h2.astype(jnp.bfloat16), w34_ref[...],
                preferred_element_type=jnp.float32) + b34_ref[...]
    col = jax.lax.broadcasted_iota(jnp.int32, z.shape, 1)
    tanh_head = max_action * jnp.tanh(z)
    sigm_head = max_action * (1.0 / (1.0 + jnp.exp(-z)))
    o_ref[...] = jnp.where(col < 2, tanh_head, sigm_head).astype(o_ref.dtype)


def init_params(key, state_dim, action_dim):
    """nn.Linear-style init (U[-1/sqrt(fan_in), 1/sqrt(fan_in)]), stored (fan_in, fan_out)."""
    dims = [(state_dim, 256), (256, 128), (128, 2), (128, action_dim - 2)]
    params = []
    for fan_in, fan_out in dims:
        key, kw, kb = jax.random.split(key, 3)
        bound = 1.0 / float(fan_in) ** 0.5
        w = jax.random.uniform(kw, (fan_in, fan_out), jnp.float32, -bound, bound)
        b = jax.random.uniform(kb, (1, fan_out), jnp.float32, -bound, bound)
        params += [w, b]
    return tuple(params)


def prepare_params(raw):
    """Fuse layer_3/layer_4 into one matmul, pad its output to 128 lanes, cast weights bf16."""
    w1, b1, w2, b2, w3, b3, w4, b4 = raw
    w34 = jnp.concatenate([w3, w4], axis=1)
    b34 = jnp.concatenate([b3, b4], axis=1)
    out_dim = w34.shape[1]
    w34 = jnp.pad(w34, ((0, 0), (0, OUT_PAD - out_dim)))
    b34 = jnp.pad(b34, ((0, 0), (0, OUT_PAD - out_dim)))
    return (w1.astype(jnp.bfloat16), b1,
            w2.astype(jnp.bfloat16), b2,
            w34.astype(jnp.bfloat16), b34)


@functools.partial(jax.jit, static_argnames=("max_action", "action_dim"))
def actor_forward(x, params, *, max_action, action_dim):
    """Pallas implementation of Actor.forward(x): (B, state_dim) f32 -> (B, action_dim) f32."""
    w1, b1, w2, b2, w34, b34 = params
    B, S = x.shape
    # Pad batch to a sublane/bf16-friendly multiple and pick a batch tile.
    B_pad = _round_up(max(B, 1), 16)
    TB = min(256, B_pad)
    B_pad = _round_up(B_pad, TB)
    if B_pad != B:
        x = jnp.pad(x, ((0, B_pad - B), (0, 0)))
    x = x.astype(jnp.bfloat16)

    kernel = functools.partial(actor_kernel, max_action=float(max_action))
    out = pl.pallas_call(
        kernel,
        out_shape=jax.ShapeDtypeStruct((B_pad, OUT_PAD), jnp.float32),
        grid=(B_pad // TB,),
        in_specs=[
            pl.BlockSpec((TB, S), lambda i: (i, 0)),           # x tiles stream
            pl.BlockSpec((S, 256), lambda i: (0, 0)),           # weights stay resident
            pl.BlockSpec((1, 256), lambda i: (0, 0)),
            pl.BlockSpec((256, 128), lambda i: (0, 0)),
            pl.BlockSpec((1, 128), lambda i: (0, 0)),
            pl.BlockSpec((128, OUT_PAD), lambda i: (0, 0)),
            pl.BlockSpec((1, OUT_PAD), lambda i: (0, 0)),
        ],
        out_specs=pl.BlockSpec((TB, OUT_PAD), lambda i: (i, 0)),
        compiler_params=pltpu.CompilerParams(
            dimension_semantics=("parallel",)),
    )(x, w1, b1, w2, b2, w34, b34)
    return out[:B, :action_dim]


def actor_reference(x, prepared, max_action, action_dim):
    """Plain-JAX reference mirroring the kernel's dtype flow (bf16 matmul inputs, f32 acc)."""
    w1, b1, w2, b2, w34, b34 = prepared
    h1 = jnp.maximum(
        jnp.dot(x.astype(jnp.bfloat16), w1, preferred_element_type=jnp.float32) + b1, 0.0)
    h2 = jnp.maximum(
        jnp.dot(h1.astype(jnp.bfloat16), w2, preferred_element_type=jnp.float32) + b2, 0.0)
    z = jnp.dot(h2.astype(jnp.bfloat16), w34, preferred_element_type=jnp.float32) + b34
    x1 = max_action * jnp.tanh(z[:, :2])
    x2 = max_action * (1.0 / (1.0 + jnp.exp(-z[:, 2:action_dim])))
    return jnp.concatenate([x1, x2], axis=1)


if __name__ == "__main__":
    batch, state_dim, action_dim, max_action = 2, 16, 8, 2.0
    key = jax.random.PRNGKey(0)
    key, kx = jax.random.split(key)
    x = jax.random.normal(kx, (batch, state_dim), jnp.float32)

    raw = init_params(key, state_dim, action_dim)
    params = prepare_params(raw)

    out = actor_forward(x, params, max_action=max_action, action_dim=action_dim)
    out = jax.block_until_ready(out)

    ref = actor_reference(x, params, max_action, action_dim)
    assert out.shape == (batch, action_dim), out.shape
    assert jnp.allclose(out, ref, atol=1e-3, rtol=1e-3), (out, ref)
    print("KERNEL_OK")
</pallas_src>

<mosaic_0001>
module attributes {stable_mosaic.version = 11 : i64} {
  func.func @actor_kernel(%arg0: i32, %arg1: memref<16x16xbf16, #tpu.memory_space<vmem>>, %arg2: memref<16x256xbf16, #tpu.memory_space<vmem>>, %arg3: memref<1x256xf32, #tpu.memory_space<vmem>>, %arg4: memref<256x128xbf16, #tpu.memory_space<vmem>>, %arg5: memref<1x128xf32, #tpu.memory_space<vmem>>, %arg6: memref<128x128xbf16, #tpu.memory_space<vmem>>, %arg7: memref<1x128xf32, #tpu.memory_space<vmem>>, %arg8: memref<16x128xf32, #tpu.memory_space<vmem>>) attributes {dimension_semantics = [#tpu.dimension_semantics<parallel>], iteration_bounds = array<i64: 1>, scalar_prefetch = 0 : i64, scratch_operands = 0 : i64, tpu.core_type = #tpu.core_type<tc>, window_params = [{transform_indices = @transform_0, window_bounds = array<i64: 16, 16>}, {pipeline_mode = #tpu.pipeline_mode<synchronous>, transform_indices = @transform_1, window_bounds = array<i64: 16, 256>}, {pipeline_mode = #tpu.pipeline_mode<synchronous>, transform_indices = @transform_2, window_bounds = array<i64: 1, 256>}, {pipeline_mode = #tpu.pipeline_mode<synchronous>, transform_indices = @transform_3, window_bounds = array<i64: 256, 128>}, {pipeline_mode = #tpu.pipeline_mode<synchronous>, transform_indices = @transform_4, window_bounds = array<i64: 1, 128>}, {pipeline_mode = #tpu.pipeline_mode<synchronous>, transform_indices = @transform_5, window_bounds = array<i64: 128, 128>}, {pipeline_mode = #tpu.pipeline_mode<synchronous>, transform_indices = @transform_6, window_bounds = array<i64: 1, 128>}, {transform_indices = @transform_7, window_bounds = array<i64: 16, 128>}]} {
    %c0 = arith.constant 0 : index
    %c0_0 = arith.constant 0 : index
    %0 = vector.load %arg1[%c0, %c0_0] : memref<16x16xbf16, #tpu.memory_space<vmem>>, vector<16x16xbf16>
    %c0_1 = arith.constant 0 : index
    %c0_2 = arith.constant 0 : index
    %1 = vector.load %arg2[%c0_1, %c0_2] : memref<16x256xbf16, #tpu.memory_space<vmem>>, vector<16x256xbf16>
    %cst = arith.constant dense<0.000000e+00> : vector<16x256xf32>
    %2 = tpu.matmul %0, %1, %cst {dimension_numbers = #tpu.dot_dimension_numbers<[1], [0], [0], [1], [0, 0, 1, 1], [], []>} : vector<16x16xbf16>, vector<16x256xbf16>, vector<16x256xf32> -> vector<16x256xf32>
    %c0_3 = arith.constant 0 : index
    %c0_4 = arith.constant 0 : index
    %3 = vector.load %arg3[%c0_3, %c0_4] : memref<1x256xf32, #tpu.memory_space<vmem>>, vector<1x256xf32>
    %4 = vector.broadcast %3 : vector<1x256xf32> to vector<16x256xf32>
    %5 = arith.addf %2, %4 : vector<16x256xf32>
    %cst_5 = arith.constant 0.000000e+00 : f32
    %6 = vector.broadcast %cst_5 : f32 to vector<16x256xf32>
    %7 = arith.maximumf %5, %6 : vector<16x256xf32>
    %8 = arith.truncf %7 : vector<16x256xf32> to vector<16x256xbf16>
    %c0_6 = arith.constant 0 : index
    %c0_7 = arith.constant 0 : index
    %9 = vector.load %arg4[%c0_6, %c0_7] : memref<256x128xbf16, #tpu.memory_space<vmem>>, vector<256x128xbf16>
    %cst_8 = arith.constant dense<0.000000e+00> : vector<16x128xf32>
    %10 = tpu.matmul %8, %9, %cst_8 {dimension_numbers = #tpu.dot_dimension_numbers<[1], [0], [0], [1], [0, 0, 1, 1], [], []>} : vector<16x256xbf16>, vector<256x128xbf16>, vector<16x128xf32> -> vector<16x128xf32>
    %c0_9 = arith.constant 0 : index
    %c0_10 = arith.constant 0 : index
    %11 = vector.load %arg5[%c0_9, %c0_10] : memref<1x128xf32, #tpu.memory_space<vmem>>, vector<1x128xf32>
    %12 = vector.broadcast %11 : vector<1x128xf32> to vector<16x128xf32>
    %13 = arith.addf %10, %12 : vector<16x128xf32>
    %cst_11 = arith.constant 0.000000e+00 : f32
    %14 = vector.broadcast %cst_11 : f32 to vector<16x128xf32>
    %15 = arith.maximumf %13, %14 : vector<16x128xf32>
    %16 = arith.truncf %15 : vector<16x128xf32> to vector<16x128xbf16>
    %c0_12 = arith.constant 0 : index
    %c0_13 = arith.constant 0 : index
    %17 = vector.load %arg6[%c0_12, %c0_13] : memref<128x128xbf16, #tpu.memory_space<vmem>>, vector<128x128xbf16>
    %cst_14 = arith.constant dense<0.000000e+00> : vector<16x128xf32>
    %18 = tpu.matmul %16, %17, %cst_14 {dimension_numbers = #tpu.dot_dimension_numbers<[1], [0], [0], [1], [0, 0, 1, 1], [], []>} : vector<16x128xbf16>, vector<128x128xbf16>, vector<16x128xf32> -> vector<16x128xf32>
    %c0_15 = arith.constant 0 : index
    %c0_16 = arith.constant 0 : index
    %19 = vector.load %arg7[%c0_15, %c0_16] : memref<1x128xf32, #tpu.memory_space<vmem>>, vector<1x128xf32>
    %20 = vector.broadcast %19 : vector<1x128xf32> to vector<16x128xf32>
    %21 = arith.addf %18, %20 : vector<16x128xf32>
    %22 = tpu.iota {dimensions = array<i32: 1>} : vector<16x128xi32>
    %23 = math.tanh %21 : vector<16x128xf32>
    %cst_17 = arith.constant 2.000000e+00 : f32
    %24 = vector.broadcast %cst_17 : f32 to vector<16x128xf32>
    %25 = arith.mulf %24, %23 : vector<16x128xf32>
    %cst_18 = arith.constant 0.000000e+00 : f32
    %26 = vector.broadcast %cst_18 : f32 to vector<16x128xf32>
    %27 = arith.subf %26, %21 : vector<16x128xf32>
    %28 = math.exp %27 : vector<16x128xf32>
    %cst_19 = arith.constant 1.000000e+00 : f32
    %29 = vector.broadcast %cst_19 : f32 to vector<16x128xf32>
    %30 = arith.addf %29, %28 : vector<16x128xf32>
    %cst_20 = arith.constant 1.000000e+00 : f32
    %31 = vector.broadcast %cst_20 : f32 to vector<16x128xf32>
    %32 = arith.divf %31, %30 : vector<16x128xf32>
    %cst_21 = arith.constant 2.000000e+00 : f32
    %33 = vector.broadcast %cst_21 : f32 to vector<16x128xf32>
    %34 = arith.mulf %33, %32 : vector<16x128xf32>
    %c2_i32 = arith.constant 2 : i32
    %35 = vector.broadcast %c2_i32 : i32 to vector<16x128xi32>
    %36 = arith.cmpi slt, %22, %35 : vector<16x128xi32>
    %37 = arith.select %36, %25, %34 : vector<16x128xi1>, vector<16x128xf32>
    %c0_22 = arith.constant 0 : index
    %c0_23 = arith.constant 0 : index
    %38 = vector.load %arg8[%c0_22, %c0_23] : memref<16x128xf32, #tpu.memory_space<vmem>>, vector<16x128xf32>
    tpu.vector_store %arg8[%c0_22, %c0_23], %37 {strides = array<i32>} : memref<16x128xf32, #tpu.memory_space<vmem>>, vector<16x128xf32>,
    return
  }
  func.func @transform_0(%arg0: i32) -> (i32, i32) {
    %c0_i32 = arith.constant 0 : i32
    %c0_i32_0 = arith.constant 0 : i32
    return %arg0, %c0_i32 : i32, i32
  }
  func.func @transform_1(%arg0: i32) -> (i32, i32) {
    %c0_i32 = arith.constant 0 : i32
    %c0_i32_0 = arith.constant 0 : i32
    %c0_i32_1 = arith.constant 0 : i32
    return %c0_i32, %c0_i32_0 : i32, i32
  }
  func.func @transform_2(%arg0: i32) -> (i32, i32) {
    %c0_i32 = arith.constant 0 : i32
    %c0_i32_0 = arith.constant 0 : i32
    %c0_i32_1 = arith.constant 0 : i32
    return %c0_i32, %c0_i32_0 : i32, i32
  }
  func.func @transform_3(%arg0: i32) -> (i32, i32) {
    %c0_i32 = arith.constant 0 : i32
    %c0_i32_0 = arith.constant 0 : i32
    %c0_i32_1 = arith.constant 0 : i32
    return %c0_i32, %c0_i32_0 : i32, i32
  }
  func.func @transform_4(%arg0: i32) -> (i32, i32) {
    %c0_i32 = arith.constant 0 : i32
    %c0_i32_0 = arith.constant 0 : i32
    %c0_i32_1 = arith.constant 0 : i32
    return %c0_i32, %c0_i32_0 : i32, i32
  }
  func.func @transform_5(%arg0: i32) -> (i32, i32) {
    %c0_i32 = arith.constant 0 : i32
    %c0_i32_0 = arith.constant 0 : i32
    %c0_i32_1 = arith.constant 0 : i32
    return %c0_i32, %c0_i32_0 : i32, i32
  }
  func.func @transform_6(%arg0: i32) -> (i32, i32) {
    %c0_i32 = arith.constant 0 : i32
    %c0_i32_0 = arith.constant 0 : i32
    %c0_i32_1 = arith.constant 0 : i32
    return %c0_i32, %c0_i32_0 : i32, i32
  }
  func.func @transform_7(%arg0: i32) -> (i32, i32) {
    %c0_i32 = arith.constant 0 : i32
    %c0_i32_0 = arith.constant 0 : i32
    return %arg0, %c0_i32 : i32, i32
  }
}

</mosaic_0001>

<bundles_post_ra>
// kernel: actor_forward.1
= control target key start
LH: loop header
LB: loop body
LE: loop exit
PB: predicated region body
PF: predicated region fallthrough
CT: control target
= control target key end

     0   :  { %12 = vsyncpa [#allocation3], 0  ;;  %s749_s0 = inlined_call_operand.vmem [shape: bf16[16,16], index: 0, kind: input, shape index: {}]   ;;  %s750_s1 = inlined_call_operand.hbm [shape: bf16[16,256], index: 1, kind: input, shape index: {}]   ;;  %s751_s2 = inlined_call_operand.vmem [shape: f32[1,256], index: 2, kind: input, shape index: {}]   ;;  %s752_s3 = inlined_call_operand.hbm [shape: bf16[256,128], index: 3, kind: input, shape index: {}]   ;;  %s753_s4 = inlined_call_operand.vmem [shape: f32[1,128], index: 4, kind: input, shape index: {}]   ;;  %s754_s5 = inlined_call_operand.hbm [shape: bf16[128,128], index: 5, kind: input, shape index: {}]   ;;  %s755_s6 = inlined_call_operand.vmem [shape: f32[1,128], index: 6, kind: input, shape index: {}]   ;;  %s756_s7 = inlined_call_operand.vmem [shape: f32[16,128], index: 7, kind: output, shape index: {}]  }
   0x1   :  { %13 = vsyncpa [#allocation5], 0  ;;  %s35_s26 = sshll.u32 %s752_s3, 4  ;;  %s673_s27 = smov [#allocation4]   ;;  %s36_s26 = int_to_ptr.hbm [resolvable:$true] %s35_s26 }
   0x2   :  { %s37_s28 = sshll.u32 %s673_s27, 4  ;;  %s20_s8 = sshll.u32 %s750_s1, 4  ;;  %s38_s28 = int_to_ptr.vmem [resolvable:$true] %s37_s28  ;;  %s21_s8 = int_to_ptr.hbm [resolvable:$true] %s20_s8 }
   0x3   :  { %s674_s9 = smov 64   ;;  %s675_s10 = smov 4  }
   0x4   :  { %43 = dma.hbm_to_vmem [thread:$0]  %s36_s26, 2048, %s38_s28, [#allocation5], %s674_s9, %s674_s9, %s675_s10  }
   0x5   :  { %s676_s11 = smov [#allocation2]   ;;  %s677_s13 = smov 128  }
   0x6   :  { %s22_s12 = sshll.u32 %s676_s11, 4  ;;  %s678_s14 = smov 8   ;;  %s23_s12 = int_to_ptr.vmem [resolvable:$true] %s22_s12 }
   0x7   :  { %28 = dma.hbm_to_vmem [thread:$0]  %s21_s8, 256, %s23_s12, [#allocation3], %s677_s13, %s677_s13, %s678_s14  }
   0x8   :  { %s50_s16 = sshll.u32 %s754_s5, 4  ;;  %s679_s17 = smov [#allocation6]   ;;  %s51_s16 = int_to_ptr.hbm [resolvable:$true] %s50_s16 }
   0x9   :  { %s52_s18 = sshll.u32 %s679_s17, 4  ;;  %s53_s18 = int_to_ptr.vmem [resolvable:$true] %s52_s18 }
   0xa   :  { %58 = dma.hbm_to_vmem [thread:$0]  %s51_s16, 1024, %s53_s18, [#allocation5], %s674_s9, %s674_s9, %s675_s10  }
   0xb   :  { %669 = dma.done.wait [#allocation3], 256  }
   0xc   :  { %670 = vsyncadd [#allocation3], 4294967040 }
   0xd   :  { %671 = dma.done.wait [#allocation5], 3072  }
   0xe   :  { %672 = vsyncadd [#allocation5], 4294964224  ;;  %v445_v0 = vld [vmem:[#allocation2] sm:$0xf]  ;;  %v551_v1 = vld [vmem:[#allocation2 + $0x4] sm:$0xf0] }
   0xf   :  { %v446_v2 = vor.u32 %v551_v1, %v445_v0  ;;  %v550_v3 = vld [vmem:[#allocation2 + $0x4] sm:$0xf]  ;;  %v447_v4 = vld [vmem:[#allocation2 + $0x8] sm:$0xf0]  ;;  %vm99_vm0 = vcmask 130048   ;;  %v557_v9 = vld [vmem:[#allocation4 + $0x28] sm:$0xff] }
  0x10   :  { %v559_v5 = vld [vmem:[#allocation4 + $0x38] sm:$0xff]  ;;  %v549_v6 = vld [vmem:[%s749_s0] sm:$0xff]  ;;  %v450_v7 = vor.u32 %v550_v3, %v447_v4  ;;  %v556_v10 = vld [vmem:[#allocation4 + $0x20] sm:$0xff] }
  0x11   :  { %110 = vmatpush.bf16.msra.mxu1 %v446_v2  ;;  %269 = vmatpush.bf16.msra.mxu2 %v559_v5  ;;  %v558_v8 = vld [vmem:[#allocation4 + $0x30] sm:$0xff]  ;;  %v555_v11 = vld [vmem:[#allocation4 + $0x18] sm:$0xff]  ;;  %v553_v15 = vld [vmem:[#allocation4 + $0x8] sm:$0xff] }
  0x12   :  { %v567_v12 = vld [vmem:[#allocation4 + $0x78] sm:$0xff]  ;;  %v554_v13 = vld [vmem:[#allocation4 + $0x10] sm:$0xff]  ;;  %v565_v16 = vld [vmem:[#allocation4 + $0x68] sm:$0xff] }
  0x13   :  { %283 = vmatpush.bf16.msra.mxu3 %v567_v12  ;;  %v566_v14 = vld [vmem:[#allocation4 + $0x70] sm:$0xff]  ;;  %v552_v17 = vld [vmem:[#allocation4] sm:$0xff]  ;;  %v563_v19 = vld [vmem:[#allocation4 + $0x58] sm:$0xff] }
  0x14   :  { %451 = vmatmul.msk.bf16.vlgmr.msra.gmra.mxu1 %vm99_vm0, %v549_v6  ;;  %v564_v18 = vld [vmem:[#allocation4 + $0x60] sm:$0xff]  ;;  %v562_v20 = vld [vmem:[#allocation4 + $0x50] sm:$0xff]  ;;  %v561_v21 = vld [vmem:[#allocation4 + $0x48] sm:$0xff] }
  0x15   :  { %124 = vmatpush.bf16.msrb.mxu1 %v450_v7  ;;  %270 = vmatpush.bf16.msra.mxu2 %v558_v8  ;;  %v560_v22 = vld [vmem:[#allocation4 + $0x40] sm:$0xff]  ;;  %v78_v23 = vld [vmem:[%s751_s2] sm:$0x3]  ;;  %v575_v40 = vld [vmem:[#allocation6 + $0x38] sm:$0xff] }
  0x16   :  { %v80_v25 = vperm.slane %v78_v23, 0  ;;  %v81_v33 = vperm.slane %v78_v23, 1  ;;  %368 = vmatpush.bf16.msra.mxu0 %v575_v40  ;;  %v574_v41 = vld [vmem:[#allocation6 + $0x30] sm:$0xff]  ;;  %v573_v42 = vld [vmem:[#allocation6 + $0x28] sm:$0xff]  ;;  %v572_v43 = vld [vmem:[#allocation6 + $0x20] sm:$0xff] }
  0x17   :  { %284 = vmatpush.bf16.msra.mxu3 %v566_v14  ;;  %v571_v44 = vld [vmem:[#allocation6 + $0x18] sm:$0xff]  ;;  %v570_v45 = vld [vmem:[#allocation6 + $0x10] sm:$0xff]  ;;  %v569_v46 = vld [vmem:[#allocation6 + $0x8] sm:$0xff] }
  0x18   :  { %v568_v47 = vld [vmem:[#allocation6] sm:$0xff]  ;;  %v583_v50 = vld [vmem:[%s753_s4] ss:$0 sm:$0xff] }
  0x19   :  { %271 = vmatpush.bf16.msra.mxu2 %v557_v9  ;;  %v584_v60 = vld [vmem:[%s755_s6] ss:$0 sm:$0xff] }
  0x1a   :  { %369 = vmatpush.bf16.msra.mxu0 %v574_v41 }
  0x1b   :  { %285 = vmatpush.bf16.msra.mxu3 %v565_v16 }
  0x1d   :  { %272 = vmatpush.bf16.msra.mxu2 %v556_v10 }
  0x1e   :  { %370 = vmatpush.bf16.msra.mxu0 %v573_v42 }
  0x1f   :  { %286 = vmatpush.bf16.msra.mxu3 %v564_v18 }
  0x21   :  { %273 = vmatpush.bf16.msra.mxu2 %v555_v11  ;;  %v382_v11 = vlaneseq }
  0x22   :  { %371 = vmatpush.bf16.msra.mxu0 %v572_v43 }
  0x23   :  { %287 = vmatpush.bf16.msra.mxu3 %v563_v19  ;;  %v383_v16 = vand.u32 127, %v382_v11 }
  0x24   :  { %452 = vmatmul.msk.bf16.vlgmr.msrb.gmra.mxu1 %vm99_vm0, %v549_v6 }
  0x25   :  { %274 = vmatpush.bf16.msra.mxu2 %v554_v13  ;;  %vm428_vm5 = vcmp.lt.s32.totalorder %v383_v16, 2 }
  0x26   :  { %372 = vmatpush.bf16.msra.mxu0 %v571_v44 }
  0x27   :  { %288 = vmatpush.bf16.msra.mxu3 %v562_v20 }
  0x29   :  { %275 = vmatpush.bf16.msra.mxu2 %v553_v15 }
  0x2a   :  { %373 = vmatpush.bf16.msra.mxu0 %v570_v45 }
  0x2b   :  { %289 = vmatpush.bf16.msra.mxu3 %v561_v21 }
  0x2d   :  { %276 = vmatpush.bf16.msra.mxu2 %v552_v17 }
  0x2e   :  { %374 = vmatpush.bf16.msra.mxu0 %v569_v46 }
  0x2f   :  { %290 = vmatpush.bf16.msra.mxu3 %v560_v22 }
  0x32   :  { %375 = vmatpush.bf16.msra.mxu0 %v568_v47 }
  0x91   :  { %v112_v24 = vpop.f32.mrf.mxu1 }
  0x92   :  { %v113_v26 = vadd.f32 %v112_v24, %v80_v25 }
  0x94   :  { %v131_v29 = vmax.f32 %v113_v26, 0.0 }
  0x99   :  { %v114_v27 = vpop.f32.mrf.mxu1 }
  0x9a   :  { %v115_v28 = vadd.f32 %v114_v27, %v80_v25 }
  0x9c   :  { %v133_v30 = vmax.f32 %v115_v28, 0.0 }
  0x9e   :  { %v135_v31 = vpack.c.bf16 %v133_v30, %v131_v29 }
  0xa0   :  { %277 = vmatmul.bf16.vlgmr.msra.gmra.mxu2 %v135_v31 }
  0xa1   :  { %v126_v32 = vpop.f32.mrf.mxu1 }
  0xa2   :  { %v127_v34 = vadd.f32 %v126_v32, %v81_v33 }
  0xa4   :  { %v132_v37 = vmax.f32 %v127_v34, 0.0 }
  0xa9   :  { %v128_v35 = vpop.f32.mrf.mxu1 }
  0xaa   :  { %v129_v36 = vadd.f32 %v128_v35, %v81_v33 }
  0xac   :  { %v134_v38 = vmax.f32 %v129_v36, 0.0 }
  0xae   :  { %v136_v39 = vpack.c.bf16 %v134_v38, %v132_v37 }
  0xb0   :  { %291 = vmatmul.bf16.vlgmr.msra.gmra.mxu3 %v136_v39 }
 0x123   :  { %v278_v48 = vpop.f32.mrf.mxu2 }
 0x124   :  { %v279_v52 = vadd.f32 %v583_v50, %v278_v48 }
 0x12b   :  { %v280_v51 = vpop.f32.mrf.mxu2 }
 0x12c   :  { %v281_v53 = vadd.f32 %v583_v50, %v280_v51 }
 0x133   :  { %v292_v49 = vpop.f32.mrf.mxu3 }
 0x134   :  { %v293_v54 = vadd.f32 %v292_v49, %v279_v52 }
 0x136   :  { %v297_v57 = vmax.f32 %v293_v54, 0.0 }
 0x13b   :  { %v294_v55 = vpop.f32.mrf.mxu3 }
 0x13c   :  { %v295_v56 = vadd.f32 %v294_v55, %v281_v53 }
 0x13e   :  { %v298_v58 = vmax.f32 %v295_v56, 0.0 }
 0x140   :  { %v299_v59 = vpack.c.bf16 %v298_v58, %v297_v57 }
 0x142   :  { %376 = vmatmul.bf16.vlgmr.msra.gmra.mxu0 %v299_v59 }
 0x1bf   :  { %v377_v61 = vpop.f32.mrf.mxu0 }
 0x1c0   :  { %v378_v62 = vadd.f32 %v584_v60, %v377_v61 }
 0x1c2   :  { %v388_v63 = vsub.f32 0.0, %v378_v62 }
 0x1c4   :  { %v390_v0 = vmul.f32 1.442695, %v388_v63 }
 0x1c6   :  { %585 = vpow2.f32 %v390_v0 }
 0x1c7   :  { %v379_v1 = vpop.f32.mrf.mxu0 }
 0x1c8   :  { %v380_v2 = vadd.f32 %v584_v60, %v379_v1 }
 0x1ca   :  { %v389_v3 = vsub.f32 0.0, %v380_v2 }
 0x1cc   :  { %v586_v4 = vpop.eup %585  ;;  %v392_v5 = vmul.f32 1.442695, %v389_v3 }
 0x1cd   :  { %v394_v6 = vadd.f32 1.0, %v586_v4 }
 0x1ce   :  { %587 = vpow2.f32 %v392_v5 }
 0x1cf   :  { %589 = vrcp.f32 %v394_v6  ;;  %v407_v13 = vand.u32 2147483648, %v394_v6  ;;  %v405_v15 = vand.u32 2147483647, %v394_v6  ;;  %vm401_vm2 = vweird.f32 %v394_v6 }
 0x1d0   :  { %591 = vtanh.f32 %v378_v62 }
 0x1d1   :  { %v408_v20 = vor.u32 1.1754944e-38, %v407_v13  ;;  %vm406_vm4 = vcmp.eq.f32.partialorder %v405_v15, 8.507059e+37 }
 0x1d4   :  { %v588_v7 = vpop.eup %587 }
 0x1d5   :  { %v590_v8 = vpop.eup %589  ;;  %v395_v9 = vadd.f32 1.0, %v588_v7 }
 0x1d6   :  { %v397_v10 = vmul.f32 %v590_v8, %v394_v6  ;;  %vm402_vm1 = vweird.f32 %v590_v8  ;;  %v592_v17 = vpop.eup %591 }
 0x1d7   :  { %593 = vrcp.f32 %v395_v9  ;;  %vm403_vm3 = vmor %vm401_vm2, %vm402_vm1  ;;  %v386_v24 = vmul.f32 2.0, %v592_v17  ;;  %v422_v27 = vand.u32 2147483648, %v395_v9  ;;  %v420_v30 = vand.u32 2147483647, %v395_v9 }
 0x1d8   :  { %v398_v12 = vsub.f32 1.0, %v397_v10  ;;  %595 = vtanh.f32 %v380_v2  ;;  %vm416_vm7 = vweird.f32 %v395_v9 }
 0x1d9   :  { %v423_v33 = vor.u32 1.1754944e-38, %v422_v27  ;;  %vm421_vm9 = vcmp.eq.f32.partialorder %v420_v30, 8.507059e+37 }
 0x1da   :  { %v399_v14 = vmul.f32 %v590_v8, %v398_v12 }
 0x1dc   :  { %v400_v18 = vadd.f32 %v590_v8, %v399_v14 }
 0x1dd   :  { %v594_v19 = vpop.eup %593 }
 0x1de   :  { %v404_v21 = vsel %vm403_vm3, %v590_v8, %v400_v18  ;;  %v412_v22 = vmul.f32 %v594_v19, %v395_v9  ;;  %vm417_vm6 = vweird.f32 %v594_v19  ;;  %v596_v32 = vpop.eup %595 }
 0x1df   :  { %v409_v23 = vsel %vm406_vm4, %v408_v20, %v404_v21  ;;  %vm418_vm8 = vmor %vm416_vm7, %vm417_vm6  ;;  %v387_v36 = vmul.f32 2.0, %v596_v32 }
 0x1e0   :  { %v426_v25 = vmul.f32 2.0, %v409_v23  ;;  %v413_v26 = vsub.f32 1.0, %v412_v22 }
 0x1e2   :  { %v429_v28 = vsel %vm428_vm5, %v386_v24, %v426_v25  ;;  %v414_v29 = vmul.f32 %v594_v19, %v413_v26 }
 0x1e3   :  { %431 = vst [vmem:[%s756_s7] sm:$0xff] %v429_v28 }
 0x1e4   :  { %v415_v31 = vadd.f32 %v594_v19, %v414_v29 }
 0x1e6   :  { %v419_v34 = vsel %vm418_vm8, %v594_v19, %v415_v31 }
 0x1e7   :  { %v424_v35 = vsel %vm421_vm9, %v423_v33, %v419_v34 }
 0x1e8   :  { %v427_v37 = vmul.f32 2.0, %v424_v35 }
 0x1ea   :  { %v430_v38 = vsel %vm428_vm5, %v387_v36, %v427_v37 }
 0x1eb   :  { %432 = vst [vmem:[%s756_s7 + $0x8] sm:$0xff] %v430_v38 }
 0x1ec   :  { %437 = vsyncpa [#allocation3], 1 }
 0x1ed   :  { %438 = vsyncpa [#allocation5], 1 }

</bundles_post_ra>
